<compile_context>
chip_gen: v7x
topology: tpu7x:2x2x1
jax: 0.10.0
libtpu: 0.0.40
codegen_flags: <defaults>
</compile_context>

<pallas_src>
import jax
import jax.numpy as jnp
from jax.experimental import pallas as pl
from jax.experimental.pallas import tpu as pltpu

_LN_EPS = 1e-12


def _round_up(x, m):
    return (x + m - 1) // m * m


def _self_output_kernel(h_ref, x_ref, w_ref, b_ref, gamma_ref, beta_ref, o_ref):
    # h_ref:  (tm, H) row tile of hidden_states (compute dtype, e.g. bf16)
    # x_ref:  (tm, H) row tile of residual input_tensor (compute dtype)
    # w_ref:  (H, H)  dense weight (compute dtype), laid out so y = h @ w
    # b_ref / gamma_ref / beta_ref: (1, H) f32
    # Matmul operands stay in their storage dtype (bf16-native MXU path on
    # v5e/v6e/v7x); accumulation and all LayerNorm math are f32.
    y = jnp.dot(h_ref[...], w_ref[...], preferred_element_type=jnp.float32)
    y = y + b_ref[...]
    # TODO(synk): dropout(p=config.hidden_dropout_prob) omitted — identity in eval mode.
    y = y + x_ref[...].astype(jnp.float32)

    mean = jnp.mean(y, axis=-1, keepdims=True)
    cent = y - mean
    var = jnp.mean(cent * cent, axis=-1, keepdims=True)
    out = cent * jax.lax.rsqrt(var + _LN_EPS)
    out = out * gamma_ref[...] + beta_ref[...]
    o_ref[...] = out.astype(o_ref.dtype)


def _build_call(tm, H, m_pad, out_dtype, vmem_limit_bytes, cost, single_buffer_consts):
    def row_spec():
        return pl.BlockSpec((tm, H), lambda i: (i, 0))

    def const_spec(shape):
        # Grid-invariant operands: constant index_map (DMA'd once). Optionally
        # single-buffered so they don't reserve 2x their VMEM footprint.
        if single_buffer_consts:
            return pl.BlockSpec(shape, lambda i: (0,) * len(shape),
                                pipeline_mode=pl.Buffered(1))
        return pl.BlockSpec(shape, lambda i: (0,) * len(shape))

    return pl.pallas_call(
        _self_output_kernel,
        out_shape=jax.ShapeDtypeStruct((m_pad, H), out_dtype),
        grid_spec=pltpu.PrefetchScalarGridSpec(
            num_scalar_prefetch=0,
            grid=(m_pad // tm,),
            in_specs=[
                row_spec(),            # hidden_states rows
                row_spec(),            # residual rows
                const_spec((H, H)),    # dense weight (VMEM resident)
                const_spec((1, H)),    # dense bias
                const_spec((1, H)),    # LN gamma
                const_spec((1, H)),    # LN beta
            ],
            out_specs=pl.BlockSpec((tm, H), lambda i: (i, 0)),
        ),
        compiler_params=pltpu.CompilerParams(
            dimension_semantics=("parallel",),
            vmem_limit_bytes=vmem_limit_bytes,
        ),
        cost_estimate=cost,
    )


def bert_self_output(hidden_states, input_tensor, w, b, gamma, beta, *,
                     tm=512, compute_dtype=jnp.bfloat16):
    """Fused dense + bias + (eval-mode) dropout + residual + LayerNorm.

    hidden_states, input_tensor: (B, S, H).  w: (H, H) with y = x @ w
    (i.e. torch `dense.weight.T`).  b / gamma / beta: (H,).
    """
    B, S, H = hidden_states.shape
    M = B * S
    out_dtype = hidden_states.dtype

    # Streaming / matmul operands in compute_dtype (bf16 by default); bias and
    # LayerNorm affine params stay f32.
    h2 = hidden_states.reshape(M, H).astype(compute_dtype)
    x2 = input_tensor.reshape(M, H).astype(compute_dtype)
    wc = w.astype(compute_dtype)
    b2 = b.reshape(1, H).astype(jnp.float32)
    g2 = gamma.reshape(1, H).astype(jnp.float32)
    bt2 = beta.reshape(1, H).astype(jnp.float32)

    cd_bytes = jnp.dtype(compute_dtype).itemsize
    out_bytes = jnp.dtype(out_dtype).itemsize

    # Row tile: multiple of 8 sublanes, shrunk if the double-buffered I/O tiles
    # would exceed a v7x-safe (~24 MiB) budget.
    tm = int(min(tm, _round_up(M, 8)))
    tm = max(8, _round_up(tm, 8))
    per_row_io = H * (2 * cd_bytes + out_bytes)       # h + x + out bytes per row
    while tm > 8 and 2 * tm * per_row_io > 24 * 1024 * 1024:
        tm = max(8, _round_up(tm // 2, 8))

    # Pad rows so the grid covers M exactly (no dropped tail rows, every DMA
    # and store stays unmasked).  Padded rows are sliced off afterwards.
    m_pad = _round_up(M, tm)
    if m_pad != M:
        h2 = jnp.pad(h2, ((0, m_pad - M), (0, 0)))
        x2 = jnp.pad(x2, ((0, m_pad - M), (0, 0)))

    const_bytes = H * H * cd_bytes + 3 * H * 4
    budget = 2 * tm * per_row_io + 2 * const_bytes    # conservative: consts x2
    vmem_limit_bytes = int(min(48 * 1024 * 1024,
                               max(32 * 1024 * 1024, int(budget * 1.5))))

    cost = pl.CostEstimate(
        flops=2 * m_pad * H * H,
        transcendentals=m_pad,                        # one rsqrt per row
        bytes_accessed=m_pad * per_row_io + const_bytes,
    )

    args = (h2, x2, wc, b2, g2, bt2)
    try:
        out = _build_call(tm, H, m_pad, out_dtype, vmem_limit_bytes, cost,
                          single_buffer_consts=True)(*args)
    except Exception:
        # Some jax versions reject pl.Buffered(1) on a top-level pallas_call;
        # fall back to default double-buffering of the invariant operands.
        out = _build_call(tm, H, m_pad, out_dtype, vmem_limit_bytes, cost,
                          single_buffer_consts=False)(*args)

    return out[:M].reshape(B, S, H)


def reference(hidden_states, input_tensor, w, b, gamma, beta):
    y = jnp.einsum("bsh,hk->bsk", hidden_states.astype(jnp.float32),
                   w.astype(jnp.float32)) + b
    y = y + input_tensor.astype(jnp.float32)
    mean = jnp.mean(y, axis=-1, keepdims=True)
    var = jnp.mean((y - mean) ** 2, axis=-1, keepdims=True)
    return ((y - mean) / jnp.sqrt(var + _LN_EPS)) * gamma + beta


if __name__ == "__main__":
    key = jax.random.PRNGKey(0)
    k_h, k_x, k_w, k_b, k_g, k_bt = jax.random.split(key, 6)

    # Small demo shapes consistent with the module.  (Production H is 768/1024;
    # H=32 only lights up 32/128 lanes, so this is a correctness harness, not a
    # benchmark.)
    B, S, H = 2, 8, 32
    hidden_states = jax.random.normal(k_h, (B, S, H), dtype=jnp.float32)
    input_tensor = jax.random.normal(k_x, (B, S, H), dtype=jnp.float32)

    # nn.Linear(H, H): kernel expects w s.t. y = x @ w (i.e. torch weight.T);
    # here we sample w directly (deterministic init).
    w = jax.random.normal(k_w, (H, H), dtype=jnp.float32) * 0.02
    b = jax.random.normal(k_b, (H,), dtype=jnp.float32) * 0.02
    gamma = 1.0 + 0.1 * jax.random.normal(k_g, (H,), dtype=jnp.float32)
    beta = 0.1 * jax.random.normal(k_bt, (H,), dtype=jnp.float32)

    ref = reference(hidden_states, input_tensor, w, b, gamma, beta)

    # 1) Default path: bf16 streaming operands on the MXU, f32 accumulate + LN.
    out_bf16 = bert_self_output(hidden_states, input_tensor, w, b, gamma, beta)
    out_bf16 = jax.block_until_ready(out_bf16)
    assert out_bf16.shape == (B, S, H)
    assert jnp.allclose(out_bf16, ref, atol=3e-2, rtol=3e-2), "bf16 path mismatch"

    # 2) f32 path with a small row tile and ragged M to exercise the multi-step
    #    grid and the row-padding path; tight tolerance vs the f32 reference.
    B2, S2 = 2, 9   # M = 18 -> padded to 24 with tm=8
    hs2 = jax.random.normal(k_h, (B2, S2, H), dtype=jnp.float32)
    it2 = jax.random.normal(k_x, (B2, S2, H), dtype=jnp.float32)
    ref2 = reference(hs2, it2, w, b, gamma, beta)
    out_f32 = bert_self_output(hs2, it2, w, b, gamma, beta,
                               tm=8, compute_dtype=jnp.float32)
    out_f32 = jax.block_until_ready(out_f32)
    assert out_f32.shape == (B2, S2, H)
    assert jnp.allclose(out_f32, ref2, atol=1e-4, rtol=1e-4), "f32 path mismatch"

    print("KERNEL_OK")
</pallas_src>

<mosaic_0001>
module attributes {stable_mosaic.version = 11 : i64} {
  func.func @_self_output_kernel(%arg0: i32, %arg1: memref<16x32xbf16, #tpu.memory_space<vmem>>, %arg2: memref<16x32xbf16, #tpu.memory_space<vmem>>, %arg3: memref<32x32xbf16, #tpu.memory_space<vmem>>, %arg4: memref<1x32xf32, #tpu.memory_space<vmem>>, %arg5: memref<1x32xf32, #tpu.memory_space<vmem>>, %arg6: memref<1x32xf32, #tpu.memory_space<vmem>>, %arg7: memref<16x32xf32, #tpu.memory_space<vmem>>) attributes {dimension_semantics = [#tpu.dimension_semantics<parallel>], iteration_bounds = array<i64: 1>, scalar_prefetch = 0 : i64, scratch_operands = 0 : i64, tpu.core_type = #tpu.core_type<tc>, window_params = [{transform_indices = @transform_0, window_bounds = array<i64: 16, 32>}, {transform_indices = @transform_1, window_bounds = array<i64: 16, 32>}, {pipeline_mode = #tpu.pipeline_mode<synchronous>, transform_indices = @transform_2, window_bounds = array<i64: 32, 32>}, {pipeline_mode = #tpu.pipeline_mode<synchronous>, transform_indices = @transform_3, window_bounds = array<i64: 1, 32>}, {pipeline_mode = #tpu.pipeline_mode<synchronous>, transform_indices = @transform_4, window_bounds = array<i64: 1, 32>}, {pipeline_mode = #tpu.pipeline_mode<synchronous>, transform_indices = @transform_5, window_bounds = array<i64: 1, 32>}, {transform_indices = @transform_6, window_bounds = array<i64: 16, 32>}]} {
    %c0 = arith.constant 0 : index
    %c0_0 = arith.constant 0 : index
    %0 = vector.load %arg1[%c0, %c0_0] : memref<16x32xbf16, #tpu.memory_space<vmem>>, vector<16x32xbf16>
    %c0_1 = arith.constant 0 : index
    %c0_2 = arith.constant 0 : index
    %1 = vector.load %arg3[%c0_1, %c0_2] : memref<32x32xbf16, #tpu.memory_space<vmem>>, vector<32x32xbf16>
    %cst = arith.constant dense<0.000000e+00> : vector<16x32xf32>
    %2 = tpu.matmul %0, %1, %cst {dimension_numbers = #tpu.dot_dimension_numbers<[1], [0], [0], [1], [0, 0, 1, 1], [], []>} : vector<16x32xbf16>, vector<32x32xbf16>, vector<16x32xf32> -> vector<16x32xf32>
    %c0_3 = arith.constant 0 : index
    %c0_4 = arith.constant 0 : index
    %3 = vector.load %arg4[%c0_3, %c0_4] : memref<1x32xf32, #tpu.memory_space<vmem>>, vector<1x32xf32>
    %4 = vector.broadcast %3 : vector<1x32xf32> to vector<16x32xf32>
    %5 = arith.addf %2, %4 : vector<16x32xf32>
    %c0_5 = arith.constant 0 : index
    %c0_6 = arith.constant 0 : index
    %6 = vector.load %arg2[%c0_5, %c0_6] : memref<16x32xbf16, #tpu.memory_space<vmem>>, vector<16x32xbf16>
    %7 = arith.extf %6 : vector<16x32xbf16> to vector<16x32xf32>
    %8 = arith.addf %5, %7 : vector<16x32xf32>
    %cst_7 = arith.constant dense<0.000000e+00> : vector<16xf32>
    %9 = vector.multi_reduction <add>, %8, %cst_7 [1] : vector<16x32xf32> to vector<16xf32>
    %10 = vector.shape_cast %9 : vector<16xf32> to vector<16x1xf32>
    %cst_8 = arith.constant 3.200000e+01 : f32
    %11 = vector.broadcast %cst_8 : f32 to vector<16x1xf32>
    %12 = arith.divf %10, %11 : vector<16x1xf32>
    %13 = vector.broadcast %12 : vector<16x1xf32> to vector<16x32xf32>
    %14 = arith.subf %8, %13 : vector<16x32xf32>
    %15 = arith.mulf %14, %14 : vector<16x32xf32>
    %cst_9 = arith.constant dense<0.000000e+00> : vector<16xf32>
    %16 = vector.multi_reduction <add>, %15, %cst_9 [1] : vector<16x32xf32> to vector<16xf32>
    %17 = vector.shape_cast %16 : vector<16xf32> to vector<16x1xf32>
    %cst_10 = arith.constant 3.200000e+01 : f32
    %18 = vector.broadcast %cst_10 : f32 to vector<16x1xf32>
    %19 = arith.divf %17, %18 : vector<16x1xf32>
    %cst_11 = arith.constant 9.99999996E-13 : f32
    %20 = vector.broadcast %cst_11 : f32 to vector<16x1xf32>
    %21 = arith.addf %19, %20 : vector<16x1xf32>
    %22 = math.rsqrt %21 : vector<16x1xf32>
    %23 = vector.broadcast %22 : vector<16x1xf32> to vector<16x32xf32>
    %24 = arith.mulf %14, %23 : vector<16x32xf32>
    %c0_12 = arith.constant 0 : index
    %c0_13 = arith.constant 0 : index
    %25 = vector.load %arg5[%c0_12, %c0_13] : memref<1x32xf32, #tpu.memory_space<vmem>>, vector<1x32xf32>
    %26 = vector.broadcast %25 : vector<1x32xf32> to vector<16x32xf32>
    %27 = arith.mulf %24, %26 : vector<16x32xf32>
    %c0_14 = arith.constant 0 : index
    %c0_15 = arith.constant 0 : index
    %28 = vector.load %arg6[%c0_14, %c0_15] : memref<1x32xf32, #tpu.memory_space<vmem>>, vector<1x32xf32>
    %29 = vector.broadcast %28 : vector<1x32xf32> to vector<16x32xf32>
    %30 = arith.addf %27, %29 : vector<16x32xf32>
    %c0_16 = arith.constant 0 : index
    %c0_17 = arith.constant 0 : index
    %31 = vector.load %arg7[%c0_16, %c0_17] : memref<16x32xf32, #tpu.memory_space<vmem>>, vector<16x32xf32>
    tpu.vector_store %arg7[%c0_16, %c0_17], %30 {strides = array<i32>} : memref<16x32xf32, #tpu.memory_space<vmem>>, vector<16x32xf32>,
    return
  }
  func.func @transform_0(%arg0: i32) -> (i32, i32) {
    %c0_i32 = arith.constant 0 : i32
    %c0_i32_0 = arith.constant 0 : i32
    return %arg0, %c0_i32 : i32, i32
  }
  func.func @transform_1(%arg0: i32) -> (i32, i32) {
    %c0_i32 = arith.constant 0 : i32
    %c0_i32_0 = arith.constant 0 : i32
    return %arg0, %c0_i32 : i32, i32
  }
  func.func @transform_2(%arg0: i32) -> (i32, i32) {
    %c0_i32 = arith.constant 0 : i32
    %c0_i32_0 = arith.constant 0 : i32
    %c0_i32_1 = arith.constant 0 : i32
    return %c0_i32, %c0_i32_0 : i32, i32
  }
  func.func @transform_3(%arg0: i32) -> (i32, i32) {
    %c0_i32 = arith.constant 0 : i32
    %c0_i32_0 = arith.constant 0 : i32
    %c0_i32_1 = arith.constant 0 : i32
    return %c0_i32, %c0_i32_0 : i32, i32
  }
  func.func @transform_4(%arg0: i32) -> (i32, i32) {
    %c0_i32 = arith.constant 0 : i32
    %c0_i32_0 = arith.constant 0 : i32
    %c0_i32_1 = arith.constant 0 : i32
    return %c0_i32, %c0_i32_0 : i32, i32
  }
  func.func @transform_5(%arg0: i32) -> (i32, i32) {
    %c0_i32 = arith.constant 0 : i32
    %c0_i32_0 = arith.constant 0 : i32
    %c0_i32_1 = arith.constant 0 : i32
    return %c0_i32, %c0_i32_0 : i32, i32
  }
  func.func @transform_6(%arg0: i32) -> (i32, i32) {
    %c0_i32 = arith.constant 0 : i32
    %c0_i32_0 = arith.constant 0 : i32
    return %arg0, %c0_i32 : i32, i32
  }
}

module attributes {stable_mosaic.version = 11 : i64} {
  func.func @_self_output_kernel(%arg0: i32, %arg1: memref<16x32xbf16, #tpu.memory_space<vmem>>, %arg2: memref<16x32xbf16, #tpu.memory_space<vmem>>, %arg3: memref<32x32xbf16, #tpu.memory_space<vmem>>, %arg4: memref<1x32xf32, #tpu.memory_space<vmem>>, %arg5: memref<1x32xf32, #tpu.memory_space<vmem>>, %arg6: memref<1x32xf32, #tpu.memory_space<vmem>>, %arg7: memref<16x32xf32, #tpu.memory_space<vmem>>) attributes {dimension_semantics = [#tpu.dimension_semantics<parallel>], iteration_bounds = array<i64: 1>, scalar_prefetch = 0 : i64, scratch_operands = 0 : i64, tpu.core_type = #tpu.core_type<tc>, window_params = [{transform_indices = @transform_0, window_bounds = array<i64: 16, 32>}, {transform_indices = @transform_1, window_bounds = array<i64: 16, 32>}, {pipeline_mode = #tpu.pipeline_mode<synchronous>, transform_indices = @transform_2, window_bounds = array<i64: 32, 32>}, {pipeline_mode = #tpu.pipeline_mode<synchronous>, transform_indices = @transform_3, window_bounds = array<i64: 1, 32>}, {pipeline_mode = #tpu.pipeline_mode<synchronous>, transform_indices = @transform_4, window_bounds = array<i64: 1, 32>}, {pipeline_mode = #tpu.pipeline_mode<synchronous>, transform_indices = @transform_5, window_bounds = array<i64: 1, 32>}, {transform_indices = @transform_6, window_bounds = array<i64: 16, 32>}]} {
    %c0 = arith.constant 0 : index
    %c0_0 = arith.constant 0 : index
    %0 = vector.load %arg1[%c0, %c0_0] : memref<16x32xbf16, #tpu.memory_space<vmem>>, vector<16x32xbf16>
    %c0_1 = arith.constant 0 : index
    %c0_2 = arith.constant 0 : index
    %1 = vector.load %arg3[%c0_1, %c0_2] : memref<32x32xbf16, #tpu.memory_space<vmem>>, vector<32x32xbf16>
    %cst = arith.constant dense<0.000000e+00> : vector<16x32xf32>
    %2 = tpu.matmul %0, %1, %cst {dimension_numbers = #tpu.dot_dimension_numbers<[1], [0], [0], [1], [0, 0, 1, 1], [], []>} : vector<16x32xbf16>, vector<32x32xbf16>, vector<16x32xf32> -> vector<16x32xf32>
    %c0_3 = arith.constant 0 : index
    %c0_4 = arith.constant 0 : index
    %3 = vector.load %arg4[%c0_3, %c0_4] : memref<1x32xf32, #tpu.memory_space<vmem>>, vector<1x32xf32>
    %4 = vector.broadcast %3 : vector<1x32xf32> to vector<16x32xf32>
    %5 = arith.addf %2, %4 : vector<16x32xf32>
    %c0_5 = arith.constant 0 : index
    %c0_6 = arith.constant 0 : index
    %6 = vector.load %arg2[%c0_5, %c0_6] : memref<16x32xbf16, #tpu.memory_space<vmem>>, vector<16x32xbf16>
    %7 = arith.extf %6 : vector<16x32xbf16> to vector<16x32xf32>
    %8 = arith.addf %5, %7 : vector<16x32xf32>
    %cst_7 = arith.constant dense<0.000000e+00> : vector<16xf32>
    %9 = vector.multi_reduction <add>, %8, %cst_7 [1] : vector<16x32xf32> to vector<16xf32>
    %10 = vector.shape_cast %9 : vector<16xf32> to vector<16x1xf32>
    %cst_8 = arith.constant 3.200000e+01 : f32
    %11 = vector.broadcast %cst_8 : f32 to vector<16x1xf32>
    %12 = arith.divf %10, %11 : vector<16x1xf32>
    %13 = vector.broadcast %12 : vector<16x1xf32> to vector<16x32xf32>
    %14 = arith.subf %8, %13 : vector<16x32xf32>
    %15 = arith.mulf %14, %14 : vector<16x32xf32>
    %cst_9 = arith.constant dense<0.000000e+00> : vector<16xf32>
    %16 = vector.multi_reduction <add>, %15, %cst_9 [1] : vector<16x32xf32> to vector<16xf32>
    %17 = vector.shape_cast %16 : vector<16xf32> to vector<16x1xf32>
    %cst_10 = arith.constant 3.200000e+01 : f32
    %18 = vector.broadcast %cst_10 : f32 to vector<16x1xf32>
    %19 = arith.divf %17, %18 : vector<16x1xf32>
    %cst_11 = arith.constant 9.99999996E-13 : f32
    %20 = vector.broadcast %cst_11 : f32 to vector<16x1xf32>
    %21 = arith.addf %19, %20 : vector<16x1xf32>
    %22 = math.rsqrt %21 : vector<16x1xf32>
    %23 = vector.broadcast %22 : vector<16x1xf32> to vector<16x32xf32>
    %24 = arith.mulf %14, %23 : vector<16x32xf32>
    %c0_12 = arith.constant 0 : index
    %c0_13 = arith.constant 0 : index
    %25 = vector.load %arg5[%c0_12, %c0_13] : memref<1x32xf32, #tpu.memory_space<vmem>>, vector<1x32xf32>
    %26 = vector.broadcast %25 : vector<1x32xf32> to vector<16x32xf32>
    %27 = arith.mulf %24, %26 : vector<16x32xf32>
    %c0_14 = arith.constant 0 : index
    %c0_15 = arith.constant 0 : index
    %28 = vector.load %arg6[%c0_14, %c0_15] : memref<1x32xf32, #tpu.memory_space<vmem>>, vector<1x32xf32>
    %29 = vector.broadcast %28 : vector<1x32xf32> to vector<16x32xf32>
    %30 = arith.addf %27, %29 : vector<16x32xf32>
    %c0_16 = arith.constant 0 : index
    %c0_17 = arith.constant 0 : index
    %31 = vector.load %arg7[%c0_16, %c0_17] : memref<16x32xf32, #tpu.memory_space<vmem>>, vector<16x32xf32>
    tpu.vector_store %arg7[%c0_16, %c0_17], %30 {strides = array<i32>} : memref<16x32xf32, #tpu.memory_space<vmem>>, vector<16x32xf32>,
    return
  }
  func.func @transform_0(%arg0: i32) -> (i32, i32) {
    %c0_i32 = arith.constant 0 : i32
    %c0_i32_0 = arith.constant 0 : i32
    return %arg0, %c0_i32 : i32, i32
  }
  func.func @transform_1(%arg0: i32) -> (i32, i32) {
    %c0_i32 = arith.constant 0 : i32
    %c0_i32_0 = arith.constant 0 : i32
    return %arg0, %c0_i32 : i32, i32
  }
  func.func @transform_2(%arg0: i32) -> (i32, i32) {
    %c0_i32 = arith.constant 0 : i32
    %c0_i32_0 = arith.constant 0 : i32
    %c0_i32_1 = arith.constant 0 : i32
    return %c0_i32, %c0_i32_0 : i32, i32
  }
  func.func @transform_3(%arg0: i32) -> (i32, i32) {
    %c0_i32 = arith.constant 0 : i32
    %c0_i32_0 = arith.constant 0 : i32
    %c0_i32_1 = arith.constant 0 : i32
    return %c0_i32, %c0_i32_0 : i32, i32
  }
  func.func @transform_4(%arg0: i32) -> (i32, i32) {
    %c0_i32 = arith.constant 0 : i32
    %c0_i32_0 = arith.constant 0 : i32
    %c0_i32_1 = arith.constant 0 : i32
    return %c0_i32, %c0_i32_0 : i32, i32
  }
  func.func @transform_5(%arg0: i32) -> (i32, i32) {
    %c0_i32 = arith.constant 0 : i32
    %c0_i32_0 = arith.constant 0 : i32
    %c0_i32_1 = arith.constant 0 : i32
    return %c0_i32, %c0_i32_0 : i32, i32
  }
  func.func @transform_6(%arg0: i32) -> (i32, i32) {
    %c0_i32 = arith.constant 0 : i32
    %c0_i32_0 = arith.constant 0 : i32
    return %arg0, %c0_i32 : i32, i32
  }
}

</mosaic_0001>

<bundles_post_ra>
// kernel: tpu_custom_call.1
= control target key start
LH: loop header
LB: loop body
LE: loop exit
PB: predicated region body
PF: predicated region fallthrough
CT: control target
= control target key end

     0   :  { %11 = vsyncpa [#allocation3], 0  ;;  %s470_s0 = inlined_call_operand.hbm [shape: bf16[16,32], index: 0, kind: input, shape index: {}]   ;;  %s471_s1 = inlined_call_operand.hbm [shape: bf16[16,32], index: 1, kind: input, shape index: {}]   ;;  %s472_s2 = inlined_call_operand.hbm [shape: bf16[32,32], index: 2, kind: input, shape index: {}]   ;;  %s473_s3 = inlined_call_operand.vmem [shape: f32[1,32], index: 3, kind: input, shape index: {}]   ;;  %s474_s4 = inlined_call_operand.vmem [shape: f32[1,32], index: 4, kind: input, shape index: {}]   ;;  %s475_s5 = inlined_call_operand.vmem [shape: f32[1,32], index: 5, kind: input, shape index: {}]   ;;  %s476_s6 = inlined_call_operand.hbm [shape: f32[16,32], index: 6, kind: output, shape index: {}]  }
   0x1   :  { %12 = vsyncpa [#allocation6], 0 }
   0x2   :  { %13 = vsyncpa [#allocation4], 0  ;;  %s345_s21 = smov [#allocation5]   ;;  %s346_s23 = smov [#allocation2]  }
   0x3   :  { %s31_s22 = sshll.u32 %s345_s21, 4  ;;  %s19_s24 = sshll.u32 %s346_s23, 4  ;;  %s32_s22 = int_to_ptr.vmem [resolvable:$true] %s31_s22  ;;  %s390_s24 = int_to_ptr.vmem [resolvable:$true] %s19_s24 }
   0x4   :  { %s251_s27 = scalar_lea.hbm %s471_s1, 128 }
   0x5   :  { %p252_p0 = scmp.ne.s32.totalorder %s471_s1, %s251_s27  ;;  %p255_p1 = scmp.lt.u32.totalorder %s251_s27, %s471_s1 }
   0x7   :  { %p257_p2 = pnand %p255_p1, %p252_p0 }
   0x9   :  { %260 = shalt.err (!%p257_p2)
}
   0xa   :  { %s261_s8 = scalar_lea.vmem %s32_s22, 128  ;;  %p266_p4 = scmp.lt.s32.totalorder %s32_s22, %s32_s22 }
   0xb   :  { %p262_p3 = scmp.ne.s32.totalorder %s32_s22, %s261_s8  ;;  %p267_p5 = scmp.lt.s32.totalorder %s261_s8, %s261_s8 }
   0xd   :  { %p268_p6 = por %p267_p5, %p266_p4 }
   0xf   :  { %p269_p7 = pnand %p268_p6, %p262_p3 }
  0x11   :  { %272 = shalt.err (!%p269_p7)
}
  0x12   :  { %s347_s9 = smov 64   ;;  %s348_s10 = smov 4  }
  0x13   :  { %37 = dma.hbm_to_vmem [thread:$0]  %s471_s1, 128, %s32_s22, [#allocation6], %s347_s9, %s347_s9, %s348_s10  }
  0x14   :  { %s273_s15 = scalar_lea.hbm %s470_s0, 128 }
  0x15   :  { %p274_p8 = scmp.ne.s32.totalorder %s470_s0, %s273_s15  ;;  %p277_p9 = scmp.lt.u32.totalorder %s273_s15, %s470_s0 }
  0x17   :  { %p279_p10 = pnand %p277_p9, %p274_p8 }
  0x19   :  { %282 = shalt.err (!%p279_p10)
}
  0x1a   :  { %s283_s20 = scalar_lea.vmem %s390_s24, 128  ;;  %p288_p12 = scmp.lt.s32.totalorder %s390_s24, %s390_s24 }
  0x1b   :  { %p284_p11 = scmp.ne.s32.totalorder %s390_s24, %s283_s20  ;;  %p289_p13 = scmp.lt.s32.totalorder %s283_s20, %s283_s20 }
  0x1d   :  { %p290_p0 = por %p289_p13, %p288_p12 }
  0x1f   :  { %p291_p1 = pnand %p290_p0, %p284_p11 }
  0x21   :  { %294 = shalt.err (!%p291_p1)
}
  0x22   :  { %25 = dma.hbm_to_vmem [thread:$0]  %s470_s0, 128, %s390_s24, [#allocation3], %s347_s9, %s347_s9, %s348_s10  }
  0x23   :  { %s349_s22 = smov [#allocation7]   ;;  %s295_s27 = scalar_lea.hbm %s472_s2, 256 }
  0x24   :  { %s43_s23 = sshll.u32 %s349_s22, 4  ;;  %p296_p2 = scmp.ne.s32.totalorder %s472_s2, %s295_s27  ;;  %s44_s23 = int_to_ptr.vmem [resolvable:$true] %s43_s23 }
  0x25   :  { %p299_p3 = scmp.lt.u32.totalorder %s295_s27, %s472_s2 }
  0x27   :  { %p301_p4 = pnand %p299_p3, %p296_p2 }
  0x29   :  { %304 = shalt.err (!%p301_p4)
}
  0x2a   :  { %s305_s8 = scalar_lea.vmem %s44_s23, 256  ;;  %p310_p6 = scmp.lt.s32.totalorder %s44_s23, %s44_s23 }
  0x2b   :  { %p306_p5 = scmp.ne.s32.totalorder %s44_s23, %s305_s8  ;;  %p311_p7 = scmp.lt.s32.totalorder %s305_s8, %s305_s8 }
  0x2d   :  { %p312_p8 = por %p311_p7, %p310_p6 }
  0x2f   :  { %p313_p9 = pnand %p312_p8, %p306_p5 }
  0x31   :  { %316 = shalt.err (!%p313_p9)
}
  0x32   :  { %49 = dma.hbm_to_vmem [thread:$0]  %s472_s2, 256, %s44_s23, [#allocation6], %s347_s9, %s347_s9, %s348_s10  }
  0x33   :  { %339 = dma.done.wait [#allocation3], 128  }
  0x34   :  { %340 = vsyncadd [#allocation3], 4294967168 }
  0x35   :  { %341 = dma.done.wait [#allocation6], 384  }
  0x36   :  { %342 = vsyncadd [#allocation6], 4294966912  ;;  %v350_v0 = vmov 0.0   ;;  %vm351_vm0 = vmmov 0   ;;  %v244_v1 = vld [vmem:[#allocation7] sm:$0xff]   ;;  %v245_v2 = vld [vmem:[#allocation7 + $0x8] sm:$0xff]  }
  0x37   :  { %226 = vmatprep.subr.bf16.mxu0 %v350_v0  ;;  %230 = vmatprep.mubr.msk.bf16.mxu0 %vm351_vm0, %v350_v0  ;;  %v246_v3 = vld [vmem:[#allocation2] sm:$0xff]   ;;  %vm96_vm1 = vcmask 261120   ;;  %v220_v4 = vld [vmem:[#allocation5] sm:$0xff]   ;;  %s352_s13 = smov [#allocation8]  }
  0x38   :  { %227 = vmatpush3.bf16.msra.mxu0 %v244_v1  ;;  %v212_v5 = vld [vmem:[%s473_s3] ss:$0 sm:$0xff]  ;;  %v221_v6 = vunpack.c.l.bf16 %v220_v4  ;;  %v222_v10 = vunpack.c.h.bf16 %v220_v4  ;;  %s199_s14 = sshll.u32 %s352_s13, 4  ;;  %s200_s14 = int_to_ptr.vmem [resolvable:$true] %s199_s14 }
  0x39   :  { %228 = vmatprep.subr.bf16.mxu0 %v350_v0  ;;  %v217_v35 = vld [vmem:[%s474_s4] ss:$0 sm:$0xff]  ;;  %s317_s15 = scalar_lea.vmem %s200_s14, 256  ;;  %p322_p11 = scmp.lt.s32.totalorder %s200_s14, %s200_s14 }
  0x3a   :  { %v218_v37 = vld [vmem:[%s475_s5] ss:$0 sm:$0xff]  ;;  %p318_p10 = scmp.ne.s32.totalorder %s200_s14, %s317_s15  ;;  %p323_p12 = scmp.lt.s32.totalorder %s317_s15, %s317_s15 }
  0x3c   :  { %229 = vmatpush3.bf16.msra.mxu0 %v245_v2  ;;  %p324_p13 = por %p323_p12, %p322_p11 }
  0x3e   :  { %p325_p0 = pnand %p324_p13, %p318_p10 }
  0x3f   :  { %231 = vmatmul.mubr.msk.bf16.vlgmr.msra.gmra.mrb[0].mxu0 %vm96_vm1, %v246_v3 }
 0x112   :  { %v134_v7 = vpop.f32.mrb[0].mxu0 }
 0x113   :  { %v135_v8 = vadd.f32 %v212_v5, %v134_v7  ;;  %v232_v9 = vpop.f32.mrb[1].mxu0 }
 0x114   :  { %v137_v11 = vpop.f32.mrb[2].mxu0 }
 0x115   :  { %v138_v12 = vadd.f32 %v212_v5, %v137_v11  ;;  %v233_v13 = vpop.f32.mrb[3].mxu0  ;;  %v145_v14 = vadd.f32 %v221_v6, %v135_v8 }
 0x117   :  { %v147_v15 = vsel %vm96_vm1, %v145_v14, 0.0  ;;  %v146_v16 = vadd.f32 %v222_v10, %v138_v12 }
 0x118   :  { %148 = vadd.xlane.f32.xlu0 %v147_v15 }
 0x119   :  { %v150_v17 = vsel %vm96_vm1, %v146_v16, 0.0 }
 0x11c   :  { %151 = vadd.xlane.f32.xlu0 %v150_v17 }
 0x1a5   :  { %v149_v18 = vpop.xlane.xlu0 %148 }
 0x1a6   :  { %v154_v19 = vmul.f32 0.03125, %v149_v18 }
 0x1a8   :  { %v156_v20 = vsub.f32 %v145_v14, %v154_v19 }
 0x1a9   :  { %v152_v21 = vpop.xlane.xlu0 %151 }
 0x1aa   :  { %v155_v22 = vmul.f32 0.03125, %v152_v21  ;;  %v158_v23 = vmul.f32 %v156_v20, %v156_v20 }
 0x1ac   :  { %v157_v24 = vsub.f32 %v146_v16, %v155_v22  ;;  %v160_v25 = vsel %vm96_vm1, %v158_v23, 0.0 }
 0x1ad   :  { %161 = vadd.xlane.f32.xlu1 %v160_v25 }
 0x1ae   :  { %v159_v26 = vmul.f32 %v157_v24, %v157_v24 }
 0x1b0   :  { %v163_v27 = vsel %vm96_vm1, %v159_v26, 0.0 }
 0x1b1   :  { %164 = vadd.xlane.f32.xlu1 %v163_v27 }
 0x23a   :  { %v162_v28 = vpop.xlane.xlu1 %161 }
 0x23b   :  { %v166_v29 = vmul.f32 0.03125, %v162_v28 }
 0x23d   :  { %v168_v30 = vadd.f32 1e-12, %v166_v29 }
 0x23e   :  { %v165_v31 = vpop.xlane.xlu1 %164 }
 0x23f   :  { %247 = vrsqrt.f32 %v168_v30  ;;  %v167_v32 = vmul.f32 0.03125, %v165_v31 }
 0x241   :  { %v169_v33 = vadd.f32 1e-12, %v167_v32 }
 0x243   :  { %249 = vrsqrt.f32 %v169_v33 }
 0x249   :  { %v248_v34 = vpop.eup %247 }
 0x24a   :  { %v172_v36 = vmul.f32 %v248_v34, %v156_v20 }
 0x24c   :  { %v181_v38 = vmul.f32 %v217_v35, %v172_v36 }
 0x24d   :  { %v250_v39 = vpop.eup %249 }
 0x24e   :  { %v173_v40 = vmul.f32 %v250_v39, %v157_v24  ;;  %v190_v41 = vadd.f32 %v218_v37, %v181_v38 }
 0x250   :  { %v182_v42 = vmul.f32 %v217_v35, %v173_v40  ;;  %192 = vst.msk [vmem:[#allocation8] sm:$0xff] %vm96_vm1, %v190_v41 }
 0x252   :  { %v191_v43 = vadd.f32 %v218_v37, %v182_v42 }
 0x254   :  { %193 = vst.msk [vmem:[#allocation8 + $0x8] sm:$0xff] %vm96_vm1, %v191_v43 }
 0x255   :  { %328 = shalt.err (!%p325_p0)
}
 0x256   :  { %s329_s16 = scalar_lea.hbm %s476_s6, 256 }
 0x257   :  { %p330_p1 = scmp.ne.s32.totalorder %s476_s6, %s329_s16  ;;  %p333_p2 = scmp.lt.u32.totalorder %s329_s16, %s476_s6 }
 0x259   :  { %p335_p3 = pnand %p333_p2, %p330_p1 }
 0x25b   :  { %338 = shalt.err (!%p335_p3)
}
 0x25c   :  { %s353_s1 = smov 128   ;;  %s354_s21 = smov 8  }
 0x25d   :  { %205 = dma.vmem_to_hbm [thread:$0]  %s200_s14, 256, %s476_s6, [#allocation4], %s353_s1, %s353_s1, %s354_s21  }
 0x25e   :  { %343 = dma.done.wait [#allocation4], 256  }
 0x25f   :  { %344 = vsyncadd [#allocation4], 4294967040 }
 0x260   :  { %209 = vsyncpa [#allocation3], 1 }
 0x261   :  { %210 = vsyncpa [#allocation6], 1 }
 0x262   :  { %211 = vsyncpa [#allocation4], 1 }

// kernel: tpu_custom_call.1
= control target key start
LH: loop header
LB: loop body
LE: loop exit
PB: predicated region body
PF: predicated region fallthrough
CT: control target
= control target key end

     0   :  { %11 = vsyncpa [#allocation3], 0  ;;  %s470_s0 = inlined_call_operand.hbm [shape: bf16[16,32], index: 0, kind: input, shape index: {}]   ;;  %s471_s1 = inlined_call_operand.hbm [shape: bf16[16,32], index: 1, kind: input, shape index: {}]   ;;  %s472_s2 = inlined_call_operand.hbm [shape: bf16[32,32], index: 2, kind: input, shape index: {}]   ;;  %s473_s3 = inlined_call_operand.vmem [shape: f32[1,32], index: 3, kind: input, shape index: {}]   ;;  %s474_s4 = inlined_call_operand.vmem [shape: f32[1,32], index: 4, kind: input, shape index: {}]   ;;  %s475_s5 = inlined_call_operand.vmem [shape: f32[1,32], index: 5, kind: input, shape index: {}]   ;;  %s476_s6 = inlined_call_operand.hbm [shape: f32[16,32], index: 6, kind: output, shape index: {}]  }
   0x1   :  { %12 = vsyncpa [#allocation6], 0 }
   0x2   :  { %13 = vsyncpa [#allocation4], 0  ;;  %s345_s21 = smov [#allocation5]   ;;  %s346_s23 = smov [#allocation2]  }
   0x3   :  { %s31_s22 = sshll.u32 %s345_s21, 4  ;;  %s19_s24 = sshll.u32 %s346_s23, 4  ;;  %s32_s22 = int_to_ptr.vmem [resolvable:$true] %s31_s22  ;;  %s390_s24 = int_to_ptr.vmem [resolvable:$true] %s19_s24 }
   0x4   :  { %s251_s27 = scalar_lea.hbm %s471_s1, 128 }
   0x5   :  { %p252_p0 = scmp.ne.s32.totalorder %s471_s1, %s251_s27  ;;  %p255_p1 = scmp.lt.u32.totalorder %s251_s27, %s471_s1 }
   0x7   :  { %p257_p2 = pnand %p255_p1, %p252_p0 }
   0x9   :  { %260 = shalt.err (!%p257_p2)
}
   0xa   :  { %s261_s8 = scalar_lea.vmem %s32_s22, 128  ;;  %p266_p4 = scmp.lt.s32.totalorder %s32_s22, %s32_s22 }
   0xb   :  { %p262_p3 = scmp.ne.s32.totalorder %s32_s22, %s261_s8  ;;  %p267_p5 = scmp.lt.s32.totalorder %s261_s8, %s261_s8 }
   0xd   :  { %p268_p6 = por %p267_p5, %p266_p4 }
   0xf   :  { %p269_p7 = pnand %p268_p6, %p262_p3 }
  0x11   :  { %272 = shalt.err (!%p269_p7)
}
  0x12   :  { %s347_s9 = smov 64   ;;  %s348_s10 = smov 4  }
  0x13   :  { %37 = dma.hbm_to_vmem [thread:$0]  %s471_s1, 128, %s32_s22, [#allocation6], %s347_s9, %s347_s9, %s348_s10  }
  0x14   :  { %s273_s15 = scalar_lea.hbm %s470_s0, 128 }
  0x15   :  { %p274_p8 = scmp.ne.s32.totalorder %s470_s0, %s273_s15  ;;  %p277_p9 = scmp.lt.u32.totalorder %s273_s15, %s470_s0 }
  0x17   :  { %p279_p10 = pnand %p277_p9, %p274_p8 }
  0x19   :  { %282 = shalt.err (!%p279_p10)
}
  0x1a   :  { %s283_s20 = scalar_lea.vmem %s390_s24, 128  ;;  %p288_p12 = scmp.lt.s32.totalorder %s390_s24, %s390_s24 }
  0x1b   :  { %p284_p11 = scmp.ne.s32.totalorder %s390_s24, %s283_s20  ;;  %p289_p13 = scmp.lt.s32.totalorder %s283_s20, %s283_s20 }
  0x1d   :  { %p290_p0 = por %p289_p13, %p288_p12 }
  0x1f   :  { %p291_p1 = pnand %p290_p0, %p284_p11 }
  0x21   :  { %294 = shalt.err (!%p291_p1)
}
  0x22   :  { %25 = dma.hbm_to_vmem [thread:$0]  %s470_s0, 128, %s390_s24, [#allocation3], %s347_s9, %s347_s9, %s348_s10  }
  0x23   :  { %s349_s22 = smov [#allocation7]   ;;  %s295_s27 = scalar_lea.hbm %s472_s2, 256 }
  0x24   :  { %s43_s23 = sshll.u32 %s349_s22, 4  ;;  %p296_p2 = scmp.ne.s32.totalorder %s472_s2, %s295_s27  ;;  %s44_s23 = int_to_ptr.vmem [resolvable:$true] %s43_s23 }
  0x25   :  { %p299_p3 = scmp.lt.u32.totalorder %s295_s27, %s472_s2 }
  0x27   :  { %p301_p4 = pnand %p299_p3, %p296_p2 }
  0x29   :  { %304 = shalt.err (!%p301_p4)
}
  0x2a   :  { %s305_s8 = scalar_lea.vmem %s44_s23, 256  ;;  %p310_p6 = scmp.lt.s32.totalorder %s44_s23, %s44_s23 }
  0x2b   :  { %p306_p5 = scmp.ne.s32.totalorder %s44_s23, %s305_s8  ;;  %p311_p7 = scmp.lt.s32.totalorder %s305_s8, %s305_s8 }
  0x2d   :  { %p312_p8 = por %p311_p7, %p310_p6 }
  0x2f   :  { %p313_p9 = pnand %p312_p8, %p306_p5 }
  0x31   :  { %316 = shalt.err (!%p313_p9)
}
  0x32   :  { %49 = dma.hbm_to_vmem [thread:$0]  %s472_s2, 256, %s44_s23, [#allocation6], %s347_s9, %s347_s9, %s348_s10  }
  0x33   :  { %339 = dma.done.wait [#allocation3], 128  }
  0x34   :  { %340 = vsyncadd [#allocation3], 4294967168 }
  0x35   :  { %341 = dma.done.wait [#allocation6], 384  }
  0x36   :  { %342 = vsyncadd [#allocation6], 4294966912  ;;  %v350_v0 = vmov 0.0   ;;  %vm351_vm0 = vmmov 0   ;;  %v244_v1 = vld [vmem:[#allocation7] sm:$0xff]   ;;  %v245_v2 = vld [vmem:[#allocation7 + $0x8] sm:$0xff]  }
  0x37   :  { %226 = vmatprep.subr.bf16.mxu0 %v350_v0  ;;  %230 = vmatprep.mubr.msk.bf16.mxu0 %vm351_vm0, %v350_v0  ;;  %v246_v3 = vld [vmem:[#allocation2] sm:$0xff]   ;;  %vm96_vm1 = vcmask 261120   ;;  %v220_v4 = vld [vmem:[#allocation5] sm:$0xff]   ;;  %s352_s13 = smov [#allocation8]  }
  0x38   :  { %227 = vmatpush3.bf16.msra.mxu0 %v244_v1  ;;  %v212_v5 = vld [vmem:[%s473_s3] ss:$0 sm:$0xff]  ;;  %v221_v6 = vunpack.c.l.bf16 %v220_v4  ;;  %v222_v10 = vunpack.c.h.bf16 %v220_v4  ;;  %s199_s14 = sshll.u32 %s352_s13, 4  ;;  %s200_s14 = int_to_ptr.vmem [resolvable:$true] %s199_s14 }
  0x39   :  { %228 = vmatprep.subr.bf16.mxu0 %v350_v0  ;;  %v217_v35 = vld [vmem:[%s474_s4] ss:$0 sm:$0xff]  ;;  %s317_s15 = scalar_lea.vmem %s200_s14, 256  ;;  %p322_p11 = scmp.lt.s32.totalorder %s200_s14, %s200_s14 }
  0x3a   :  { %v218_v37 = vld [vmem:[%s475_s5] ss:$0 sm:$0xff]  ;;  %p318_p10 = scmp.ne.s32.totalorder %s200_s14, %s317_s15  ;;  %p323_p12 = scmp.lt.s32.totalorder %s317_s15, %s317_s15 }
  0x3c   :  { %229 = vmatpush3.bf16.msra.mxu0 %v245_v2  ;;  %p324_p13 = por %p323_p12, %p322_p11 }
  0x3e   :  { %p325_p0 = pnand %p324_p13, %p318_p10 }
  0x3f   :  { %231 = vmatmul.mubr.msk.bf16.vlgmr.msra.gmra.mrb[0].mxu0 %vm96_vm1, %v246_v3 }
 0x112   :  { %v134_v7 = vpop.f32.mrb[0].mxu0 }
 0x113   :  { %v135_v8 = vadd.f32 %v212_v5, %v134_v7  ;;  %v232_v9 = vpop.f32.mrb[1].mxu0 }
 0x114   :  { %v137_v11 = vpop.f32.mrb[2].mxu0 }
 0x115   :  { %v138_v12 = vadd.f32 %v212_v5, %v137_v11  ;;  %v233_v13 = vpop.f32.mrb[3].mxu0  ;;  %v145_v14 = vadd.f32 %v221_v6, %v135_v8 }
 0x117   :  { %v147_v15 = vsel %vm96_vm1, %v145_v14, 0.0  ;;  %v146_v16 = vadd.f32 %v222_v10, %v138_v12 }
 0x118   :  { %148 = vadd.xlane.f32.xlu0 %v147_v15 }
 0x119   :  { %v150_v17 = vsel %vm96_vm1, %v146_v16, 0.0 }
 0x11c   :  { %151 = vadd.xlane.f32.xlu0 %v150_v17 }
 0x1a5   :  { %v149_v18 = vpop.xlane.xlu0 %148 }
 0x1a6   :  { %v154_v19 = vmul.f32 0.03125, %v149_v18 }
 0x1a8   :  { %v156_v20 = vsub.f32 %v145_v14, %v154_v19 }
 0x1a9   :  { %v152_v21 = vpop.xlane.xlu0 %151 }
 0x1aa   :  { %v155_v22 = vmul.f32 0.03125, %v152_v21  ;;  %v158_v23 = vmul.f32 %v156_v20, %v156_v20 }
 0x1ac   :  { %v157_v24 = vsub.f32 %v146_v16, %v155_v22  ;;  %v160_v25 = vsel %vm96_vm1, %v158_v23, 0.0 }
 0x1ad   :  { %161 = vadd.xlane.f32.xlu1 %v160_v25 }
 0x1ae   :  { %v159_v26 = vmul.f32 %v157_v24, %v157_v24 }
 0x1b0   :  { %v163_v27 = vsel %vm96_vm1, %v159_v26, 0.0 }
 0x1b1   :  { %164 = vadd.xlane.f32.xlu1 %v163_v27 }
 0x23a   :  { %v162_v28 = vpop.xlane.xlu1 %161 }
 0x23b   :  { %v166_v29 = vmul.f32 0.03125, %v162_v28 }
 0x23d   :  { %v168_v30 = vadd.f32 1e-12, %v166_v29 }
 0x23e   :  { %v165_v31 = vpop.xlane.xlu1 %164 }
 0x23f   :  { %247 = vrsqrt.f32 %v168_v30  ;;  %v167_v32 = vmul.f32 0.03125, %v165_v31 }
 0x241   :  { %v169_v33 = vadd.f32 1e-12, %v167_v32 }
 0x243   :  { %249 = vrsqrt.f32 %v169_v33 }
 0x249   :  { %v248_v34 = vpop.eup %247 }
 0x24a   :  { %v172_v36 = vmul.f32 %v248_v34, %v156_v20 }
 0x24c   :  { %v181_v38 = vmul.f32 %v217_v35, %v172_v36 }
 0x24d   :  { %v250_v39 = vpop.eup %249 }
 0x24e   :  { %v173_v40 = vmul.f32 %v250_v39, %v157_v24  ;;  %v190_v41 = vadd.f32 %v218_v37, %v181_v38 }
 0x250   :  { %v182_v42 = vmul.f32 %v217_v35, %v173_v40  ;;  %192 = vst.msk [vmem:[#allocation8] sm:$0xff] %vm96_vm1, %v190_v41 }
 0x252   :  { %v191_v43 = vadd.f32 %v218_v37, %v182_v42 }
 0x254   :  { %193 = vst.msk [vmem:[#allocation8 + $0x8] sm:$0xff] %vm96_vm1, %v191_v43 }
 0x255   :  { %328 = shalt.err (!%p325_p0)
}
 0x256   :  { %s329_s16 = scalar_lea.hbm %s476_s6, 256 }
 0x257   :  { %p330_p1 = scmp.ne.s32.totalorder %s476_s6, %s329_s16  ;;  %p333_p2 = scmp.lt.u32.totalorder %s329_s16, %s476_s6 }
 0x259   :  { %p335_p3 = pnand %p333_p2, %p330_p1 }
 0x25b   :  { %338 = shalt.err (!%p335_p3)
}
 0x25c   :  { %s353_s1 = smov 128   ;;  %s354_s21 = smov 8  }
 0x25d   :  { %205 = dma.vmem_to_hbm [thread:$0]  %s200_s14, 256, %s476_s6, [#allocation4], %s353_s1, %s353_s1, %s354_s21  }
 0x25e   :  { %343 = dma.done.wait [#allocation4], 256  }
 0x25f   :  { %344 = vsyncadd [#allocation4], 4294967040 }
 0x260   :  { %209 = vsyncpa [#allocation3], 1 }
 0x261   :  { %210 = vsyncpa [#allocation6], 1 }
 0x262   :  { %211 = vsyncpa [#allocation4], 1 }

</bundles_post_ra>
